<compile_context>
chip_gen: v7x
topology: tpu7x:2x2x1
jax: 0.10.0
libtpu: 0.0.40
codegen_flags: <defaults>
</compile_context>

<pallas_src>
from functools import partial

import jax
import jax.numpy as jnp
from jax.experimental import pallas as pl
from jax.experimental.pallas import tpu as pltpu

_VMEM_LIMIT = 32 * 1024 * 1024  # conservative: fits v5e/v6e/v7x scoped budgets


# ----------------------------------------------------------------------------
# Fused kernel: stem conv (im2col matmul) + GELU + global-avg-pool + head
# ----------------------------------------------------------------------------
def fused_stem_pool_head_kernel(seed_ref, p_ref, w_ref, b_ref, g_ref, beta_ref,
                                fcw_ref, fcb_ref, o_ref, acc_ref,
                                *, inv_s, eps, drop_p, training):
    """Grid: (B, S // TS); axis 0 parallel (batch), axis 1 pooling reduction.

      p_ref:    [Kpad, TS] bf16   im2col patch tile (spatial on lanes)
      w_ref:    [N, Kpad]  bf16   stem conv weight
      b_ref:    [N, 1]     f32    stem conv bias
      g_ref:    [N, 1]     f32    LayerNorm gamma
      beta_ref: [N, 1]     f32    LayerNorm beta
      fcw_ref:  [N, E]     f32    replaced head fc weight
      fcb_ref:  [1, E]     f32    replaced head fc bias
      o_ref:    [1, E]     f32    per-batch output row (written on last tile)
      acc_ref:  [N, TS]    f32    wide pooling accumulator (scratch)
    """
    si = pl.program_id(1)

    @pl.when(si == 0)
    def _():
        acc_ref[...] = jnp.zeros_like(acc_ref)

    # MXU: [N, Kpad] x [Kpad, TS] -> [N, TS] f32, spatial on lanes (lane-dense).
    y = jnp.dot(w_ref[...], p_ref[...], preferred_element_type=jnp.float32)
    y = y + b_ref[...]  # bias broadcast along lanes
    # sigmoid-GELU: x * sigmoid(1.702 x)  (1 EUP exp + ~2 VALU ops / element).
    y = y * (1.0 / (1.0 + jnp.exp(y * jnp.float32(-1.702))))
    # Plain vector adds into the wide accumulator; XLU reduce deferred.
    acc_ref[...] += y

    @pl.when(si == pl.num_programs(1) - 1)
    def _():
        # Global average pool over all spatial positions.
        pooled = jnp.sum(acc_ref[...], axis=-1, keepdims=True) * jnp.float32(inv_s)  # [N,1]

        # LayerNorm over channels (channel dim lives on sublanes here).
        mu = jnp.mean(pooled, axis=0, keepdims=True)
        var = jnp.mean((pooled - mu) ** 2, axis=0, keepdims=True)
        xn = (pooled - mu) * jax.lax.rsqrt(var + jnp.float32(eps))
        xn = xn * g_ref[...] + beta_ref[...]                                          # [N,1]

        # Replaced head fc (Linear N -> E) as broadcast-multiply + sublane reduce
        # (tiny: N*E MACs once per batch; avoids a 1-wide matmul / transpose).
        y_row = jnp.sum(fcw_ref[...] * xn, axis=0, keepdims=True) + fcb_ref[...]      # [1,E]

        # Module-level ReLU.
        y_row = jnp.maximum(y_row, 0.0)

        # Module-level Dropout(drop_p): identity in eval, inverted dropout in train.
        if training and drop_p > 0.0:
            if drop_p >= 1.0:
                y_row = jnp.zeros_like(y_row)
            else:
                e = y_row.shape[-1]
                lanes = max(128, ((e + 127) // 128) * 128)
                pltpu.prng_seed(seed_ref[0] + pl.program_id(0))
                bits = pltpu.bitcast(pltpu.prng_random_bits((8, lanes)), jnp.uint32)
                thr = jnp.uint32(min(int(drop_p * (2 ** 32)), 2 ** 32 - 1))
                keep = bits[:1, :e] >= thr
                y_row = jnp.where(keep, y_row * jnp.float32(1.0 / (1.0 - drop_p)), 0.0)

        o_ref[...] = y_row


# ----------------------------------------------------------------------------
# Wrappers (layout glue in plain JAX, compute in Pallas)
# ----------------------------------------------------------------------------
def _im2col_kmajor(x, kh=3, kw=3, stride=2, pad=1, k_pad_to=32):
    """NCHW -> [B, Kpad, S] bf16 patches; K ordered (Cin, kh, kw), S = OH*OW."""
    b, c, h, w = x.shape
    xp = jnp.pad(x, ((0, 0), (0, 0), (pad, pad), (pad, pad)))
    oh = (h + 2 * pad - kh) // stride + 1
    ow = (w + 2 * pad - kw) // stride + 1
    cols = []
    for i in range(kh):
        for j in range(kw):
            cols.append(xp[:, :, i:i + stride * oh:stride, j:j + stride * ow:stride])
    p = jnp.stack(cols, axis=2)                  # [B, C, KH*KW, OH, OW]
    p = p.reshape(b, c * kh * kw, oh * ow)       # [B, K, S]
    k = c * kh * kw
    if k < k_pad_to:
        p = jnp.pad(p, ((0, 0), (0, k_pad_to - k), (0, 0)))
    return p.astype(jnp.bfloat16), oh, ow


def _pick_block_s(s, kpad, max_tile_bytes=4 << 20):
    """Whole-S tile when small (amortizes per-step overhead); otherwise the
    largest multiple-of-128 divisor of S within the budget."""
    if 2 * 2 * s * kpad <= max_tile_bytes:       # bf16 tile, double buffered
        return s
    t = (min(s, 8192) // 128) * 128
    while t >= 128:
        if s % t == 0 and 2 * 2 * t * kpad <= max_tile_bytes:
            return t
        t -= 128
    return s                                     # full S is always a legal block


def stem_pool_head(patches, params, seed_arr, *, drop_p, training, block_s=None):
    """patches [B, Kpad, S] bf16 -> output [B, E] f32 (single fused pallas_call)."""
    b, kpad, s = patches.shape
    w = params["stem_w_mat"]                     # [N, Kpad] bf16
    n = w.shape[0]
    e = params["fc_b"].shape[-1]

    if block_s is None:
        block_s = _pick_block_s(s, kpad)
    if s % block_s != 0:
        raise ValueError(f"block_s={block_s} must divide S={s}")
    if block_s != s and block_s % 128 != 0:
        raise ValueError(f"block_s={block_s} must be a multiple of 128 (or == S)")
    grid = (b, s // block_s)

    cost = pl.CostEstimate(
        flops=2 * b * s * kpad * n + 2 * b * n * e,
        transcendentals=b * s * n,
        bytes_accessed=(patches.size * 2 + w.size * 2 + b * e * 4
                        + 4 * (2 * n + n * e + e + n)),
    )

    kernel = partial(fused_stem_pool_head_kernel, inv_s=1.0 / s, eps=1e-5,
                     drop_p=drop_p, training=training)

    out = pl.pallas_call(
        kernel,
        out_shape=jax.ShapeDtypeStruct((b, 1, e), jnp.float32),
        grid_spec=pltpu.PrefetchScalarGridSpec(
            num_scalar_prefetch=1,               # dropout seed -> SMEM
            grid=grid,
            in_specs=[
                pl.BlockSpec((pl.Squeezed(), kpad, block_s),
                             lambda bi, si, sd: (bi, 0, si)),
                pl.BlockSpec((n, kpad), lambda bi, si, sd: (0, 0)),
                pl.BlockSpec((n, 1), lambda bi, si, sd: (0, 0)),
                pl.BlockSpec((n, 1), lambda bi, si, sd: (0, 0)),
                pl.BlockSpec((n, 1), lambda bi, si, sd: (0, 0)),
                pl.BlockSpec((n, e), lambda bi, si, sd: (0, 0)),
                pl.BlockSpec((1, e), lambda bi, si, sd: (0, 0)),
            ],
            out_specs=pl.BlockSpec((pl.Squeezed(), 1, e),
                                   lambda bi, si, sd: (bi, 0, 0)),
            scratch_shapes=[pltpu.VMEM((n, block_s), jnp.float32)],
        ),
        compiler_params=pltpu.CompilerParams(
            dimension_semantics=("parallel", "arbitrary"),
            vmem_limit_bytes=_VMEM_LIMIT,
        ),
        cost_estimate=cost,
    )(seed_arr, patches, w, params["stem_b"], params["ln_gamma"],
      params["ln_beta"], params["fc_w"], params["fc_b"])

    return out.reshape(b, e)


def encoder_maxvit_forward(image, params, *, drop_p=0.5, training=False, seed=0,
                           block_s=None):
    """EncoderMaxVit.forward: dropout(relu(model(image)))."""
    patches, _, _ = _im2col_kmajor(image)
    seed_arr = jnp.array([seed], dtype=jnp.int32)
    return stem_pool_head(patches, params, seed_arr, drop_p=drop_p,
                          training=training, block_s=block_s)


def init_params(key, cin=3, cstem=64, kh=3, kw=3, embedding_size=32, k_pad_to=32):
    k1, k2, k3, k4 = jax.random.split(key, 4)
    stem_w = jax.random.normal(k1, (cstem, cin, kh, kw), jnp.float32) * 0.1
    stem_b = jax.random.normal(k2, (cstem,), jnp.float32) * 0.01
    fc_w = jax.random.normal(k3, (cstem, embedding_size), jnp.float32) * 0.1
    fc_b = jax.random.normal(k4, (embedding_size,), jnp.float32) * 0.01

    k = cin * kh * kw
    w_mat = stem_w.reshape(cstem, k)             # [Cout, Cin*KH*KW]
    if k < k_pad_to:
        w_mat = jnp.pad(w_mat, ((0, 0), (0, k_pad_to - k)))

    return {
        "stem_w_mat": w_mat.astype(jnp.bfloat16),          # [Cstem, Kpad] bf16
        "stem_b": stem_b.reshape(cstem, 1),                # [Cstem, 1] f32
        "ln_gamma": jnp.ones((cstem, 1), jnp.float32),     # [Cstem, 1]
        "ln_beta": jnp.zeros((cstem, 1), jnp.float32),     # [Cstem, 1]
        "fc_w": fc_w,                                      # [Cstem, E] f32
        "fc_b": fc_b.reshape(1, embedding_size),           # [1, E] f32
    }


def _reference_forward(image, params):
    """Pure-JAX eval-mode reference (same stand-in stem) for a numeric check."""
    patches, _, _ = _im2col_kmajor(image)                        # [B, Kpad, S] bf16
    w = params["stem_w_mat"].astype(jnp.float32)                 # [N, Kpad]
    y = jnp.einsum("nk,bks->bns", w, patches.astype(jnp.float32))
    y = y + params["stem_b"][None]                               # [B, N, S]
    y = y * (1.0 / (1.0 + jnp.exp(y * (-1.702))))
    pooled = jnp.mean(y, axis=-1)                                # [B, N]
    mu = pooled.mean(-1, keepdims=True)
    var = ((pooled - mu) ** 2).mean(-1, keepdims=True)
    xn = (pooled - mu) * jax.lax.rsqrt(var + 1e-5)
    xn = xn * params["ln_gamma"][:, 0] + params["ln_beta"][:, 0]
    out = xn @ params["fc_w"] + params["fc_b"]
    return jnp.maximum(out, 0.0)


if __name__ == "__main__":
    key = jax.random.PRNGKey(0)
    k_img, k_par = jax.random.split(key)

    # Small shapes: batch=2, RGB 32x32 image, Cstem=64, embedding_size=32.
    image = jax.random.normal(k_img, (2, 3, 32, 32), jnp.float32)
    params = init_params(k_par, embedding_size=32)

    # Eval-mode forward (dropout = identity, like model.eval() in PyTorch).
    out = encoder_maxvit_forward(image, params, drop_p=0.5, training=False)
    out = jax.block_until_ready(out)
    assert out.shape == (2, 32)
    assert bool(jnp.all(out >= 0.0))              # ReLU output is non-negative

    # Same result with a smaller spatial tile (exercises init/accum/finalize).
    out_tiled = jax.block_until_ready(
        encoder_maxvit_forward(image, params, drop_p=0.5, training=False,
                               block_s=128))
    assert bool(jnp.allclose(out, out_tiled, rtol=1e-3, atol=1e-3))

    # Numeric sanity against a pure-JAX reference of the same stand-in model.
    ref = jax.block_until_ready(_reference_forward(image, params))
    assert bool(jnp.allclose(out, ref, rtol=2e-3, atol=2e-3))

    print("KERNEL_OK")
</pallas_src>

<mosaic_0001>
module attributes {stable_mosaic.version = 11 : i64} {
  func.func @fused_stem_pool_head_kernel(%arg0: i32, %arg1: i32, %arg2: memref<1xi32, #tpu.memory_space<smem>>, %arg3: memref<1x32x256xbf16, #tpu.memory_space<vmem>>, %arg4: memref<64x32xbf16, #tpu.memory_space<vmem>>, %arg5: memref<64x1xf32, #tpu.memory_space<vmem>>, %arg6: memref<64x1xf32, #tpu.memory_space<vmem>>, %arg7: memref<64x1xf32, #tpu.memory_space<vmem>>, %arg8: memref<64x32xf32, #tpu.memory_space<vmem>>, %arg9: memref<1x32xf32, #tpu.memory_space<vmem>>, %arg10: memref<1x1x32xf32, #tpu.memory_space<vmem>>, %arg11: memref<64x256xf32, #tpu.memory_space<vmem>>) attributes {dimension_semantics = [#tpu.dimension_semantics<parallel>, #tpu.dimension_semantics<arbitrary>], iteration_bounds = array<i64: 2, 1>, scalar_prefetch = 1 : i64, scratch_operands = 1 : i64, tpu.core_type = #tpu.core_type<tc>, window_params = [{transform_indices = @transform_0, window_bounds = array<i64: 1, 32, 256>}, {pipeline_mode = #tpu.pipeline_mode<synchronous>, transform_indices = @transform_1, window_bounds = array<i64: 64, 32>}, {pipeline_mode = #tpu.pipeline_mode<synchronous>, transform_indices = @transform_2, window_bounds = array<i64: 64, 1>}, {pipeline_mode = #tpu.pipeline_mode<synchronous>, transform_indices = @transform_3, window_bounds = array<i64: 64, 1>}, {pipeline_mode = #tpu.pipeline_mode<synchronous>, transform_indices = @transform_4, window_bounds = array<i64: 64, 1>}, {pipeline_mode = #tpu.pipeline_mode<synchronous>, transform_indices = @transform_5, window_bounds = array<i64: 64, 32>}, {pipeline_mode = #tpu.pipeline_mode<synchronous>, transform_indices = @transform_6, window_bounds = array<i64: 1, 32>}, {transform_indices = @transform_7, window_bounds = array<i64: 1, 1, 32>}]} {
    %c0_i32 = arith.constant 0 : i32
    %0 = arith.cmpi eq, %arg1, %c0_i32 : i32
    %1 = arith.extui %0 : i1 to i32
    %c0_i32_0 = arith.constant 0 : i32
    %2 = arith.cmpi ne, %1, %c0_i32_0 : i32
    scf.if %2 {
      %cst_16 = arith.constant 0.000000e+00 : f32
      %24 = vector.broadcast %cst_16 : f32 to vector<64x256xf32>
      %c0_17 = arith.constant 0 : index
      %c0_18 = arith.constant 0 : index
      %25 = vector.load %arg11[%c0_17, %c0_18] : memref<64x256xf32, #tpu.memory_space<vmem>>, vector<64x256xf32>
      tpu.vector_store %arg11[%c0_17, %c0_18], %24 {strides = array<i32>} : memref<64x256xf32, #tpu.memory_space<vmem>>, vector<64x256xf32>,
    } else {
    }
    %c0 = arith.constant 0 : index
    %c0_1 = arith.constant 0 : index
    %3 = vector.load %arg4[%c0, %c0_1] : memref<64x32xbf16, #tpu.memory_space<vmem>>, vector<64x32xbf16>
    %c0_2 = arith.constant 0 : index
    %c0_3 = arith.constant 0 : index
    %c0_4 = arith.constant 0 : index
    %4 = vector.load %arg3[%c0_2, %c0_3, %c0_4] : memref<1x32x256xbf16, #tpu.memory_space<vmem>>, vector<1x32x256xbf16>
    %5 = vector.shape_cast %4 : vector<1x32x256xbf16> to vector<32x256xbf16>
    %cst = arith.constant dense<0.000000e+00> : vector<64x256xf32>
    %6 = tpu.matmul %3, %5, %cst {dimension_numbers = #tpu.dot_dimension_numbers<[1], [0], [0], [1], [0, 0, 1, 1], [], []>} : vector<64x32xbf16>, vector<32x256xbf16>, vector<64x256xf32> -> vector<64x256xf32>
    %c0_5 = arith.constant 0 : index
    %c0_6 = arith.constant 0 : index
    %7 = vector.load %arg5[%c0_5, %c0_6] : memref<64x1xf32, #tpu.memory_space<vmem>>, vector<64x1xf32>
    %8 = vector.broadcast %7 : vector<64x1xf32> to vector<64x256xf32>
    %9 = arith.addf %6, %8 : vector<64x256xf32>
    %cst_7 = arith.constant -1.702000e+00 : f32
    %10 = vector.broadcast %cst_7 : f32 to vector<64x256xf32>
    %11 = arith.mulf %9, %10 : vector<64x256xf32>
    %12 = math.exp %11 : vector<64x256xf32>
    %cst_8 = arith.constant 1.000000e+00 : f32
    %13 = vector.broadcast %cst_8 : f32 to vector<64x256xf32>
    %14 = arith.addf %13, %12 : vector<64x256xf32>
    %cst_9 = arith.constant 1.000000e+00 : f32
    %15 = vector.broadcast %cst_9 : f32 to vector<64x256xf32>
    %16 = arith.divf %15, %14 : vector<64x256xf32>
    %17 = arith.mulf %9, %16 : vector<64x256xf32>
    %c0_10 = arith.constant 0 : index
    %c0_11 = arith.constant 0 : index
    %18 = vector.load %arg11[%c0_10, %c0_11] : memref<64x256xf32, #tpu.memory_space<vmem>>, vector<64x256xf32>
    %19 = arith.addf %18, %17 : vector<64x256xf32>
    %c0_12 = arith.constant 0 : index
    %c0_13 = arith.constant 0 : index
    %20 = vector.load %arg11[%c0_12, %c0_13] : memref<64x256xf32, #tpu.memory_space<vmem>>, vector<64x256xf32>
    tpu.vector_store %arg11[%c0_12, %c0_13], %19 {strides = array<i32>} : memref<64x256xf32, #tpu.memory_space<vmem>>, vector<64x256xf32>,
    %c0_i32_14 = arith.constant 0 : i32
    %21 = arith.cmpi eq, %arg1, %c0_i32_14 : i32
    %22 = arith.extui %21 : i1 to i32
    %c0_i32_15 = arith.constant 0 : i32
    %23 = arith.cmpi ne, %22, %c0_i32_15 : i32
    scf.if %23 {
      %c0_16 = arith.constant 0 : index
      %c0_17 = arith.constant 0 : index
      %24 = vector.load %arg11[%c0_16, %c0_17] : memref<64x256xf32, #tpu.memory_space<vmem>>, vector<64x256xf32>
      %cst_18 = arith.constant dense<0.000000e+00> : vector<64xf32>
      %25 = vector.multi_reduction <add>, %24, %cst_18 [1] : vector<64x256xf32> to vector<64xf32>
      %26 = vector.shape_cast %25 : vector<64xf32> to vector<64x1xf32>
      %cst_19 = arith.constant 3.906250e-03 : f32
      %27 = vector.broadcast %cst_19 : f32 to vector<64x1xf32>
      %28 = arith.mulf %26, %27 : vector<64x1xf32>
      %cst_20 = arith.constant dense<0.000000e+00> : vector<1xf32>
      %29 = vector.multi_reduction <add>, %28, %cst_20 [0] : vector<64x1xf32> to vector<1xf32>
      %30 = vector.shape_cast %29 : vector<1xf32> to vector<1x1xf32>
      %cst_21 = arith.constant 6.400000e+01 : f32
      %31 = vector.broadcast %cst_21 : f32 to vector<1x1xf32>
      %32 = arith.divf %30, %31 : vector<1x1xf32>
      %33 = vector.broadcast %32 : vector<1x1xf32> to vector<64x1xf32>
      %34 = arith.subf %28, %33 : vector<64x1xf32>
      %35 = arith.mulf %34, %34 : vector<64x1xf32>
      %cst_22 = arith.constant dense<0.000000e+00> : vector<1xf32>
      %36 = vector.multi_reduction <add>, %35, %cst_22 [0] : vector<64x1xf32> to vector<1xf32>
      %37 = vector.shape_cast %36 : vector<1xf32> to vector<1x1xf32>
      %cst_23 = arith.constant 6.400000e+01 : f32
      %38 = vector.broadcast %cst_23 : f32 to vector<1x1xf32>
      %39 = arith.divf %37, %38 : vector<1x1xf32>
      %40 = vector.broadcast %32 : vector<1x1xf32> to vector<64x1xf32>
      %41 = arith.subf %28, %40 : vector<64x1xf32>
      %cst_24 = arith.constant 9.99999974E-6 : f32
      %42 = vector.broadcast %cst_24 : f32 to vector<1x1xf32>
      %43 = arith.addf %39, %42 : vector<1x1xf32>
      %44 = math.rsqrt %43 : vector<1x1xf32>
      %45 = vector.broadcast %44 : vector<1x1xf32> to vector<64x1xf32>
      %46 = arith.mulf %41, %45 : vector<64x1xf32>
      %c0_25 = arith.constant 0 : index
      %c0_26 = arith.constant 0 : index
      %47 = vector.load %arg6[%c0_25, %c0_26] : memref<64x1xf32, #tpu.memory_space<vmem>>, vector<64x1xf32>
      %48 = arith.mulf %46, %47 : vector<64x1xf32>
      %c0_27 = arith.constant 0 : index
      %c0_28 = arith.constant 0 : index
      %49 = vector.load %arg7[%c0_27, %c0_28] : memref<64x1xf32, #tpu.memory_space<vmem>>, vector<64x1xf32>
      %50 = arith.addf %48, %49 : vector<64x1xf32>
      %c0_29 = arith.constant 0 : index
      %c0_30 = arith.constant 0 : index
      %51 = vector.load %arg8[%c0_29, %c0_30] : memref<64x32xf32, #tpu.memory_space<vmem>>, vector<64x32xf32>
      %52 = vector.broadcast %50 : vector<64x1xf32> to vector<64x32xf32>
      %53 = arith.mulf %51, %52 : vector<64x32xf32>
      %cst_31 = arith.constant dense<0.000000e+00> : vector<32xf32>
      %54 = vector.multi_reduction <add>, %53, %cst_31 [0] : vector<64x32xf32> to vector<32xf32>
      %55 = vector.shape_cast %54 : vector<32xf32> to vector<1x32xf32>
      %c0_32 = arith.constant 0 : index
      %c0_33 = arith.constant 0 : index
      %56 = vector.load %arg9[%c0_32, %c0_33] : memref<1x32xf32, #tpu.memory_space<vmem>>, vector<1x32xf32>
      %57 = arith.addf %55, %56 : vector<1x32xf32>
      %cst_34 = arith.constant 0.000000e+00 : f32
      %58 = vector.broadcast %cst_34 : f32 to vector<1x32xf32>
      %59 = arith.maximumf %57, %58 : vector<1x32xf32>
      %c0_35 = arith.constant 0 : index
      %c0_36 = arith.constant 0 : index
      %c0_37 = arith.constant 0 : index
      %60 = vector.load %arg10[%c0_35, %c0_36, %c0_37] : memref<1x1x32xf32, #tpu.memory_space<vmem>>, vector<1x1x32xf32>
      %61 = vector.shape_cast %60 : vector<1x1x32xf32> to vector<1x32xf32>
      %62 = vector.shape_cast %59 : vector<1x32xf32> to vector<1x1x32xf32>
      tpu.vector_store %arg10[%c0_35, %c0_36, %c0_37], %62 {strides = array<i32>} : memref<1x1x32xf32, #tpu.memory_space<vmem>>, vector<1x1x32xf32>,
    } else {
    }
    return
  }
  func.func @transform_0(%arg0: i32, %arg1: i32, %arg2: memref<1xi32, #tpu.memory_space<smem>>) -> (i32, i32, i32) {
    %c0_i32 = arith.constant 0 : i32
    %c0_i32_0 = arith.constant 0 : i32
    return %arg0, %c0_i32, %arg1 : i32, i32, i32
  }
  func.func @transform_1(%arg0: i32, %arg1: i32, %arg2: memref<1xi32, #tpu.memory_space<smem>>) -> (i32, i32) {
    %c0_i32 = arith.constant 0 : i32
    %c0_i32_0 = arith.constant 0 : i32
    %c0_i32_1 = arith.constant 0 : i32
    return %c0_i32, %c0_i32_0 : i32, i32
  }
  func.func @transform_2(%arg0: i32, %arg1: i32, %arg2: memref<1xi32, #tpu.memory_space<smem>>) -> (i32, i32) {
    %c0_i32 = arith.constant 0 : i32
    %c0_i32_0 = arith.constant 0 : i32
    %c0_i32_1 = arith.constant 0 : i32
    return %c0_i32, %c0_i32_0 : i32, i32
  }
  func.func @transform_3(%arg0: i32, %arg1: i32, %arg2: memref<1xi32, #tpu.memory_space<smem>>) -> (i32, i32) {
    %c0_i32 = arith.constant 0 : i32
    %c0_i32_0 = arith.constant 0 : i32
    %c0_i32_1 = arith.constant 0 : i32
    return %c0_i32, %c0_i32_0 : i32, i32
  }
  func.func @transform_4(%arg0: i32, %arg1: i32, %arg2: memref<1xi32, #tpu.memory_space<smem>>) -> (i32, i32) {
    %c0_i32 = arith.constant 0 : i32
    %c0_i32_0 = arith.constant 0 : i32
    %c0_i32_1 = arith.constant 0 : i32
    return %c0_i32, %c0_i32_0 : i32, i32
  }
  func.func @transform_5(%arg0: i32, %arg1: i32, %arg2: memref<1xi32, #tpu.memory_space<smem>>) -> (i32, i32) {
    %c0_i32 = arith.constant 0 : i32
    %c0_i32_0 = arith.constant 0 : i32
    %c0_i32_1 = arith.constant 0 : i32
    return %c0_i32, %c0_i32_0 : i32, i32
  }
  func.func @transform_6(%arg0: i32, %arg1: i32, %arg2: memref<1xi32, #tpu.memory_space<smem>>) -> (i32, i32) {
    %c0_i32 = arith.constant 0 : i32
    %c0_i32_0 = arith.constant 0 : i32
    %c0_i32_1 = arith.constant 0 : i32
    return %c0_i32, %c0_i32_0 : i32, i32
  }
  func.func @transform_7(%arg0: i32, %arg1: i32, %arg2: memref<1xi32, #tpu.memory_space<smem>>) -> (i32, i32, i32) {
    %c0_i32 = arith.constant 0 : i32
    %c0_i32_0 = arith.constant 0 : i32
    %c0_i32_1 = arith.constant 0 : i32
    return %arg0, %c0_i32, %c0_i32_0 : i32, i32, i32
  }
}

</mosaic_0001>

<bundles_post_ra>
// kernel: tpu_custom_call.1
= control target key start
LH: loop header
LB: loop body
LE: loop exit
PB: predicated region body
PF: predicated region fallthrough
CT: control target
= control target key end

     0   :  { %14 = vsyncpa [#allocation6], 0  ;;  %s1566_s0 = inlined_call_operand.<no memory space> [shape: s32[1], index: 0, kind: input, shape index: {}]   ;;  %s1567_s1 = inlined_call_operand.vmem [shape: bf16[2,32,256], index: 1, kind: input, shape index: {}]   ;;  %s1568_s2 = inlined_call_operand.vmem [shape: bf16[64,32], index: 2, kind: input, shape index: {}]   ;;  %s1569_s3 = inlined_call_operand.vmem [shape: f32[64,1], index: 3, kind: input, shape index: {}]   ;;  %s1570_s4 = inlined_call_operand.vmem [shape: f32[64,1], index: 4, kind: input, shape index: {}]   ;;  %s1571_s5 = inlined_call_operand.vmem [shape: f32[64,1], index: 5, kind: input, shape index: {}]   ;;  %s1572_s6 = inlined_call_operand.vmem [shape: f32[64,32], index: 6, kind: input, shape index: {}]   ;;  %s1573_s7 = inlined_call_operand.vmem [shape: f32[1,32], index: 7, kind: input, shape index: {}]   ;;  %s1574_s8 = inlined_call_operand.hbm [shape: f32[2,1,32], index: 8, kind: output, shape index: {}]  }
   0x1   :  { %16 = vsyncpa [#allocation6 + $0x1], 0  ;;  %s1263_s26 = smov 0   ;;  %s1265_s27 = smov 0  }
   0x2   :  { %s1267_s28 = smov 0   ;;  %s1269_s29 = smov 0  }
   0x3   :  { %s1271_s30 = smov 0   ;;  %s1273_s9 = smov 0  }
   0x4 LB: > { %s975_s10 = sadd.s32 4294967295, %s1214_s9   ;;  %s976_s11 = sadd.s32 4294967294, %s1214_s9   ;;  %s1214_s9 = sphi %s1273_s9, %s22_s9   ;;  %s1210_s30 = sphi %s1271_s30, %s1581_s30   ;;  %s1206_s29 = sphi %s1269_s29, %s1580_s29   ;;  %s1202_s28 = sphi %s1267_s28, %s1579_s28   ;;  %s1198_s27 = sphi %s1265_s27, %s1578_s27   ;;  %s1194_s26 = sphi %s1263_s26, %s1577_s26  }
   0x5   : > { %s34_s12 = sadd.s32 1, %s1210_s30  ;;  %s195_s13 = sadd.s32 1, %s1202_s28 }
   0x6   : > { %p36_p0 = scmp.ge.s32.totalorder %s34_s12, 2  ;;  %p205_p1 = scmp.ne.s32.totalorder %s1202_s28, %s1198_s27 }
   0x7   : > { %p206_p2 = scmp.eq.s32.totalorder %s975_s10, 1  ;;  %p211_p3 = scmp.ne.s32.totalorder %s1198_s27, %s1194_s26 }
   0x8   : > { %s1583_s12 = smov (%p36_p0, %s34_s12), 0  ;;  %p212_p5 = scmp.eq.s32.totalorder %s976_s11, 1 }
   0x9   : > { %p1303_p4 = por %p206_p2, %p205_p1  ;;  %s192_s15 = ssub.s32 %s1210_s30, %s1583_s12 }
   0xa   : > { %p979_p6 = scmp.ge.s32.totalorder %s1214_s9, 1  ;;  %p193_p7 = scmp.eq.s32.totalorder %s192_s15, 0 }
   0xb   : > { %p1310_p8 = por %p212_p5, %p211_p3  ;;  %p261_p9 = scmp.lt.s32.totalorder %s1214_s9, 3 }
   0xc   : > { %s1316_s17 = scalar_select %p193_p7, %s1202_s28, %s195_s13  }
   0xd   : > { %p262_p10 = pnand %p979_p6, %p261_p9 }
   0xe   : > { %p297_p11 = scmp.lt.s32.totalorder (!%p262_p10), %s1206_s29, 1  ;;  %v1216_v0 = vmov (!%p262_p10), 0   ;;  %v339_v1 = vld [vmem:[%s1569_s3] sm:$0xff] (!%p262_p10)  ;;  %v341_v2 = vld [vmem:[%s1569_s3 + $0x10] sm:$0xff] (!%p262_p10)  ;;  %v340_v6 = vld [vmem:[%s1569_s3 + $0x8] sm:$0xff] (!%p262_p10)  ;;  %vm427_vm0 = vcmask (!%p262_p10), 261120  }
   0xf   : > { %265 = sbr.rel (%p262_p10) target bundleno = 705 (0x2c1), region = 48  ;;  %472 = vmatprep.mubr.bf16.mxu0 (!%p262_p10), %v1216_v0  ;;  %492 = vmatprep.mubr.bf16.mxu1 (!%p262_p10), %v1216_v0  ;;  %v342_v7 = vld [vmem:[%s1569_s3 + $0x18] sm:$0xff] (!%p262_p10)  ;;  %v1066_v9 = vld [vmem:[%s1568_s2] sm:$0xff] (!%p262_p10)   ;;  %v1067_v10 = vld [vmem:[%s1568_s2 + $0x10] sm:$0xff] (!%p262_p10)   ;;  %s294_s15 = sand.u32 (!%p262_p10), 1, %s1198_s27   ;;  %vm891_vm1 = vcmask (!%p262_p10), 253952  }
  0x10   : > { %1058 = vset.pattern.permute.xlu0 (!%p262_p10), %v1216_v0  ;;  %1059 = vset.pattern.permute.xlu1 (!%p262_p10), %v1216_v0  ;;  %v343_v11 = vld [vmem:[%s1569_s3 + $0x20] sm:$0xff] (!%p262_p10)  ;;  %v344_v12 = vld [vmem:[%s1569_s3 + $0x28] sm:$0xff] (!%p262_p10)  ;;  %v345_v13 = vld [vmem:[%s1569_s3 + $0x30] sm:$0xff] (!%p262_p10)  ;;  %s994_s20 = sshll.u32 (!%p262_p10), %s1206_s29, 4  ;;  %s295_s21 = scalar_lea.vmem (!%p262_p10), [#allocation5], %s294_s15 }
  0x11   : > { %349 = vperm.xlu0 (!%p262_p10), %1058, %v339_v1   ;;  %359 = vperm.xlu1 (!%p262_p10), %1059, %v341_v2   ;;  %v346_v14 = vld [vmem:[%s1569_s3 + $0x38] sm:$0xff] (!%p262_p10)  ;;  %v1068_v15 = vld [vmem:[%s1568_s2 + $0x8] sm:$0xff] (!%p262_p10)   ;;  %s906_s22 = sshll.u32 (!%p262_p10), %s295_s21, 4  ;;  %s1519_s24 = scalar_lea.hbm (!%p262_p10), %s1574_s8, %s994_s20  ;;  %s1521_s22 = int_to_ptr.vmem [resolvable:$true] %s906_s22 }
  0x12   : > { %v1069_v16 = vld [vmem:[%s1568_s2 + $0x18] sm:$0xff] (!%p262_p10)   ;;  %s1136_s10 = scalar_lea.vmem (!%p262_p10), %s1521_s22, 16 }
  0x13   : > { %p1137_p12 = scmp.ne.s32.totalorder (!%p262_p10), %s1521_s22, %s1136_s10 }
  0x15   : > { %354 = vperm.xlu0 (!%p262_p10), %1058, %v340_v6   ;;  %364 = vperm.xlu1 (!%p262_p10), %1059, %v342_v7   ;;  %p1138_p13 = pnand (!%p262_p10), %p1137_p12, %p1303_p4 }
  0x16   : > { %s298_s18 = scalar_select %p297_p11, %s1206_s29, 1 }
  0x17   : > { %p1139_p0 = pneg %p1138_p13  ;;  %s1217_s29 = smov [#allocation5]  }
  0x18   : > { %s997_s19 = sshll.u32 %s298_s18, 5  ;;  %s1140_s11 = sshll.u32 %s1217_s29, 4  ;;  %s1141_s11 = int_to_ptr.vmem [resolvable:$false] %s1140_s11 }
  0x19   : > { %s304_s25 = scalar_lea.vmem %s1567_s1, %s997_s19  ;;  %369 = vperm.xlu0 %1058, %v343_v11   ;;  %374 = vperm.xlu1 %1059, %v344_v12   ;;  %s1142_s13 = scalar_lea.vmem %s1141_s11, 32 }
  0x1a   : > { %v1060_v3 = vld [vmem:[%s304_s25 + $0x4] ss:$8 sps:$4 sm:$0xff]   ;;  %v1062_v4 = vld [vmem:[%s304_s25] ss:$8 sps:$4 sm:$0xff]   ;;  %v1063_v5 = vld [vmem:[%s304_s25 + $0x14] ss:$8 sps:$4 sm:$0xff]   ;;  %p1143_p1 = scmp.lt.s32.totalorder %s1521_s22, %s1141_s11  ;;  %p1144_p2 = scmp.lt.s32.totalorder %s1142_s13, %s1136_s10 }
  0x1b   : > { %440 = vmatprep.subr.bf16.mxu0 %v1060_v3  ;;  %998 = vmatprep.subr.bf16.mxu1 %v1060_v3  ;;  %v1065_v8 = vld [vmem:[%s304_s25 + $0x10] ss:$8 sps:$4 sm:$0xff]   ;;  %s894_s25 = scalar_lea.sflag [#allocation6], %s294_s15 }
  0x1c   : > { %441 = vmatpush1.bf16.msra.mxu0 %v1062_v4  ;;  %1000 = vmatpush1.bf16.msra.mxu1 %v1062_v4  ;;  %p1145_p3 = por %p1144_p2, %p1143_p1 }
  0x1d   : > { %442 = vmatprep.subr.bf16.mxu0 %v1063_v5  ;;  %999 = vmatprep.subr.bf16.mxu1 %v1063_v5 }
  0x1e   : > { %379 = vperm.xlu0 %1058, %v345_v13   ;;  %384 = vperm.xlu1 %1059, %v346_v14   ;;  %p1146_p5 = pnand %p1145_p3, %p1139_p0 }
  0x20   : > { %443 = vmatpush1.bf16.msra.mxu0 %v1065_v8  ;;  %1001 = vmatpush1.bf16.msra.mxu1 %v1065_v8 }
  0x23   : > { %990 = vmatmul.mubr.msk.bf16.vlgmr.msra.gmra.mrb[0].mxu0 %vm427_vm0, %v1066_v9  ;;  %992 = vmatmul.mubr.msk.bf16.vlgmr.msra.gmra.mrb[0].mxu1 %vm427_vm0, %v1067_v10 }
  0x24   : > { %482 = vmatprep.mubr.bf16.mxu0 %v1216_v0  ;;  %502 = vmatprep.mubr.bf16.mxu1 %v1216_v0 }
  0x2b   : > { %991 = vmatmul.mubr.msk.bf16.gmra.mrb[4].mxu0 %vm427_vm0, %v1068_v15  ;;  %993 = vmatmul.mubr.msk.bf16.gmra.mrb[4].mxu1 %vm427_vm0, %v1069_v16 }
  0x90   : > { %v350_v17 = vpop.permute.xlu0 %349  ;;  %v360_v18 = vpop.permute.xlu1 %359 }
  0x94   : > { %v355_v19 = vpop.permute.xlu0 %354  ;;  %v1363_v20 = vpop.permute.xlu1 %364 }
  0x98   : > { %v370_v21 = vpop.permute.xlu0 %369  ;;  %v375_v22 = vpop.permute.xlu1 %374 }
  0x9d   : > { %v380_v52 = vpop.permute.xlu0 %379 }
  0xf6   : > { %v474_v23 = vpop.f32.mrb[0].mxu0  ;;  %v494_v24 = vpop.f32.mrb[0].mxu1 }
  0xf7   : > { %v1365_v25 = vadd.f32 %v474_v23, %v350_v17  ;;  %v1367_v26 = vadd.f32 %v494_v24, %v370_v21  ;;  %v476_v27 = vpop.f32.mrb[1].mxu0  ;;  %v496_v28 = vpop.f32.mrb[1].mxu1 }
  0xf8   : > { %v1369_v29 = vadd.f32 %v476_v27, %v350_v17  ;;  %v1371_v30 = vadd.f32 %v496_v28, %v370_v21  ;;  %v478_v31 = vpop.f32.mrb[2].mxu0  ;;  %v498_v32 = vpop.f32.mrb[2].mxu1 }
  0xf9   : > { %v513_v33 = vmul.f32 -1.702, %v1365_v25  ;;  %v521_v34 = vmul.f32 -1.702, %v1367_v26  ;;  %v1375_v35 = vadd.f32 %v478_v31, %v355_v19  ;;  %v1377_v36 = vadd.f32 %v498_v32, %v375_v22  ;;  %v480_v37 = vpop.f32.mrb[3].mxu0  ;;  %v500_v38 = vpop.f32.mrb[3].mxu1 }
  0xfa   : > { %v514_v39 = vmul.f32 -1.702, %v1369_v29  ;;  %v522_v40 = vmul.f32 -1.702, %v1371_v30  ;;  %v1381_v41 = vadd.f32 %v480_v37, %v355_v19  ;;  %v1383_v42 = vadd.f32 %v500_v38, %v375_v22 }
  0xfb   : > { %v529_v43 = vmul.f32 1.442695, %v513_v33  ;;  %v545_v44 = vmul.f32 1.442695, %v521_v34  ;;  %v515_v45 = vmul.f32 -1.702, %v1375_v35 }
  0xfc   : > { %v531_v46 = vmul.f32 1.442695, %v514_v39  ;;  %v547_v47 = vmul.f32 1.442695, %v522_v40  ;;  %v523_v48 = vmul.f32 -1.702, %v1377_v36 }
  0xfd   : > { %1070 = vpow2.f32 %v529_v43  ;;  %v533_v49 = vmul.f32 1.442695, %v515_v45  ;;  %v516_v50 = vmul.f32 -1.702, %v1381_v41  ;;  %v524_v51 = vmul.f32 -1.702, %v1383_v42 }
  0xfe   : > { %1072 = vpow2.f32 %v545_v44  ;;  %v549_v53 = vmul.f32 1.442695, %v523_v48  ;;  %v484_v54 = vpop.f32.mrb[4].mxu0  ;;  %v504_v55 = vpop.f32.mrb[4].mxu1 }
  0xff   : > { %1074 = vpow2.f32 %v531_v46  ;;  %v535_v56 = vmul.f32 1.442695, %v516_v50  ;;  %v551_v57 = vmul.f32 1.442695, %v524_v51  ;;  %v1389_v58 = vadd.f32 %v484_v54, %v360_v18  ;;  %v486_v59 = vpop.f32.mrb[5].mxu0  ;;  %v506_v60 = vpop.f32.mrb[5].mxu1 }
 0x100   : > { %1076 = vpow2.f32 %v547_v47  ;;  %v1391_v61 = vadd.f32 %v504_v55, %v380_v52  ;;  %v1393_v62 = vadd.f32 %v486_v59, %v360_v18  ;;  %v1395_v63 = vadd.f32 %v506_v60, %v380_v52  ;;  %v488_v0 = vpop.f32.mrb[6].mxu0  ;;  %v508_v1 = vpop.f32.mrb[6].mxu1 }
 0x101   : > { %1078 = vpow2.f32 %v533_v49  ;;  %v517_v2 = vmul.f32 -1.702, %v1389_v58  ;;  %v1399_v3 = vadd.f32 %v488_v0, %v1363_v20  ;;  %v490_v4 = vpop.f32.mrb[7].mxu0  ;;  %v510_v5 = vpop.f32.mrb[7].mxu1 }
 0x102   : > { %1080 = vpow2.f32 %v549_v53  ;;  %v525_v6 = vmul.f32 -1.702, %v1391_v61  ;;  %v518_v7 = vmul.f32 -1.702, %v1393_v62  ;;  %v526_v8 = vmul.f32 -1.702, %v1395_v63  ;;  %v385_v18 = vpop.permute.xlu1 %384 }
 0x103   : > { %1082 = vpow2.f32 %v535_v56  ;;  %v537_v9 = vmul.f32 1.442695, %v517_v2  ;;  %v519_v10 = vmul.f32 -1.702, %v1399_v3  ;;  %v1405_v28 = vadd.f32 %v508_v1, %v385_v18 }
 0x104   : > { %1084 = vpow2.f32 %v551_v57  ;;  %v553_v11 = vmul.f32 1.442695, %v525_v6  ;;  %v539_v12 = vmul.f32 1.442695, %v518_v7  ;;  %v555_v13 = vmul.f32 1.442695, %v526_v8 }
 0x105   : > { %1086 = vpow2.f32 %v537_v9  ;;  %v541_v14 = vmul.f32 1.442695, %v519_v10  ;;  %v1408_v33 = vadd.f32 %v490_v4, %v1363_v20  ;;  %v1410_v38 = vadd.f32 %v510_v5, %v385_v18 }
 0x106   : > { %1088 = vpow2.f32 %v553_v11  ;;  %v527_v45 = vmul.f32 -1.702, %v1405_v28 }
 0x107   : > { %v1071_v15 = vpop.eup %1070  ;;  %1090 = vpow2.f32 %v539_v12  ;;  %v520_v48 = vmul.f32 -1.702, %v1408_v33  ;;  %v528_v50 = vmul.f32 -1.702, %v1410_v38 }
 0x108   : > { %v1073_v16 = vpop.eup %1072  ;;  %v561_v17 = vadd.f32 1.0, %v1071_v15  ;;  %1092 = vpow2.f32 %v555_v13  ;;  %v557_v55 = vmul.f32 1.442695, %v527_v45 }
 0x109   : > { %v1075_v19 = vpop.eup %1074  ;;  %v569_v21 = vadd.f32 1.0, %v1073_v16  ;;  %1094 = vpow2.f32 %v541_v14  ;;  %v543_v57 = vmul.f32 1.442695, %v520_v48  ;;  %v559_v0 = vmul.f32 1.442695, %v528_v50 }
 0x10a   : > { %v1077_v22 = vpop.eup %1076  ;;  %1096 = vrcp.f32 %v561_v17  ;;  %v562_v23 = vadd.f32 1.0, %v1075_v19 }
 0x10b   : > { %v1079_v24 = vpop.eup %1078  ;;  %1098 = vrcp.f32 %v569_v21  ;;  %v570_v27 = vadd.f32 1.0, %v1077_v22 }
 0x10c   : > { %v1081_v31 = vpop.eup %1080  ;;  %1100 = vrcp.f32 %v562_v23  ;;  %v563_v32 = vadd.f32 1.0, %v1079_v24 }
 0x10d   : > { %v1083_v34 = vpop.eup %1082  ;;  %1102 = vrcp.f32 %v570_v27  ;;  %v571_v37 = vadd.f32 1.0, %v1081_v31 }
 0x10e   : > { %v1085_v39 = vpop.eup %1084  ;;  %1104 = vrcp.f32 %v563_v32  ;;  %v564_v40 = vadd.f32 1.0, %v1083_v34 }
 0x10f   : > { %v1087_v43 = vpop.eup %1086  ;;  %1106 = vrcp.f32 %v571_v37  ;;  %v572_v44 = vadd.f32 1.0, %v1085_v39 }
 0x110   : > { %v1089_v46 = vpop.eup %1088  ;;  %1108 = vrcp.f32 %v564_v40  ;;  %v565_v47 = vadd.f32 1.0, %v1087_v43 }
 0x111   : > { %v1091_v20 = vpop.eup %1090  ;;  %1110 = vrcp.f32 %v572_v44  ;;  %v573_v49 = vadd.f32 1.0, %v1089_v46 }
 0x112   : > { %v1093_v51 = vpop.eup %1092  ;;  %1112 = vrcp.f32 %v565_v47  ;;  %v566_v52 = vadd.f32 1.0, %v1091_v20 }
 0x113   : > { %v1095_v53 = vpop.eup %1094  ;;  %1114 = vrcp.f32 %v573_v49  ;;  %v574_v54 = vadd.f32 1.0, %v1093_v51 }
 0x114   : > { %v1097_v56 = vpop.eup %1096  ;;  %1116 = vrcp.f32 %v566_v52  ;;  %v567_v16 = vadd.f32 1.0, %v1095_v53 }
 0x115   : > { %v1099_v59 = vpop.eup %1098  ;;  %v609_v60 = vmul.f32 %v1097_v56, %v1365_v25  ;;  %1118 = vrcp.f32 %v574_v54 }
 0x116   : > { %v1101_v1 = vpop.eup %1100  ;;  %v617_v2 = vmul.f32 %v1099_v59, %v1367_v26  ;;  %1120 = vpow2.f32 %v557_v55 }
 0x117   : > { %v1103_v4 = vpop.eup %1102  ;;  %v610_v5 = vmul.f32 %v1101_v1, %v1369_v29  ;;  %1122 = vpow2.f32 %v543_v57 }
 0x118   : > { %v1105_v6 = vpop.eup %1104  ;;  %v618_v7 = vmul.f32 %v1103_v4, %v1371_v30  ;;  %1124 = vpow2.f32 %v559_v0 }
 0x119   : > { %v1107_v8 = vpop.eup %1106  ;;  %v611_v9 = vmul.f32 %v1105_v6, %v1375_v35  ;;  %v692_v10 = vadd.f32 %v610_v5, %v609_v60  ;;  %1126 = vrcp.f32 %v567_v16 }
 0x11a   : > { %v1109_v11 = vpop.eup %1108  ;;  %v619_v25 = vmul.f32 %v1107_v8, %v1377_v36  ;;  %v704_v12 = vadd.f32 %v618_v7, %v617_v2 }
 0x11b   : > { %v1111_v13 = vpop.eup %1110  ;;  %v612_v26 = vmul.f32 %v1109_v11, %v1381_v41  ;;  %693 = vadd.xlane.f32.xlu0 %v692_v10 }
 0x11c   : > { %v1113_v14 = vpop.eup %1112  ;;  %v620_v29 = vmul.f32 %v1111_v13, %v1383_v42 }
 0x11d   : > { %v1115_v15 = vpop.eup %1114  ;;  %v613_v30 = vmul.f32 %v1113_v14, %v1389_v58  ;;  %v695_v17 = vadd.f32 %v612_v26, %v611_v9 }
 0x11e   : > { %v1117_v18 = vpop.eup %1116  ;;  %v621_v35 = vmul.f32 %v1115_v15, %v1391_v61  ;;  %v707_v19 = vadd.f32 %v620_v29, %v619_v25 }
 0x11f   : > { %v1119_v21 = vpop.eup %1118  ;;  %v614_v36 = vmul.f32 %v1117_v18, %v1393_v62  ;;  %696 = vadd.xlane.f32.xlu1 %v695_v17 }
 0x120   : > { %v622_v22 = vmul.f32 %v1119_v21, %v1395_v63  ;;  %v1121_v41 = vpop.eup %1120 }
 0x121   : > { %v698_v23 = vadd.f32 %v614_v36, %v613_v30  ;;  %v1123_v24 = vpop.eup %1122  ;;  %v575_v42 = vadd.f32 1.0, %v1121_v41 }
 0x122   : > { %v710_v27 = vadd.f32 %v622_v22, %v621_v35  ;;  %v1125_v31 = vpop.eup %1124  ;;  %v568_v58 = vadd.f32 1.0, %v1123_v24 }
 0x123   : > { %705 = vadd.xlane.f32.xlu1 %v704_v12  ;;  %699 = vadd.xlane.f32.xlu0 %v698_v23  ;;  %1128 = vrcp.f32 %v575_v42  ;;  %v576_v32 = vadd.f32 1.0, %v1125_v31  ;;  %v1127_v61 = vpop.eup %1126 }
 0x124   : > { %1130 = vrcp.f32 %v568_v58  ;;  %v615_v34 = vmul.f32 %v1127_v61, %v1399_v3 }
 0x125   : > { %1132 = vrcp.f32 %v576_v32 }
 0x127   : > { %711 = vadd.xlane.f32.xlu1 %v710_v27 }
 0x12d   : > { %v1129_v62 = vpop.eup %1128 }
 0x12e   : > { %v1131_v63 = vpop.eup %1130  ;;  %v623_v37 = vmul.f32 %v1129_v62, %v1405_v28 }
 0x12f   : > { %v1133_v39 = vpop.eup %1132  ;;  %v616_v40 = vmul.f32 %v1131_v63, %v1408_v33 }
 0x130   : > { %v624_v43 = vmul.f32 %v1133_v39, %v1410_v38 }
 0x131   : > { %v701_v44 = vadd.f32 %v616_v40, %v615_v34 }
 0x132   : > { %v713_v45 = vadd.f32 %v624_v43, %v623_v37 }
 0x133   : > { %702 = vadd.xlane.f32.xlu0 %v701_v44  ;;  %v780_v44 = vld [vmem:[%s1570_s4 + $0x8] sm:$0xff] }
 0x137   : > { %708 = vadd.xlane.f32.xlu0 %v707_v19 }
 0x13b   : > { %714 = vadd.xlane.f32.xlu0 %v713_v45  ;;  %v779_v45 = vld [vmem:[%s1570_s4] sm:$0xff] }
 0x1a8   : > { %v694_v46 = vpop.xlane.xlu0 %693 }
 0x1a9   : > { %v716_v49 = vmul.f32 0.00390625, %v694_v46 }
 0x1ac   : > { %v697_v47 = vpop.xlane.xlu1 %696 }
 0x1ad   : > { %v717_v20 = vmul.f32 0.00390625, %v697_v47  ;;  %v796_v47 = vld [vmem:[%s1571_s5 + $0x8] sm:$0xff] }
 0x1af   : > { %v724_v51 = vadd.f32 %v717_v20, %v716_v49 }
 0x1b0   : > { %v700_v48 = vpop.xlane.xlu0 %699  ;;  %v706_v3 = vpop.xlane.xlu1 %705 }
 0x1b1   : > { %v718_v50 = vmul.f32 0.00390625, %v700_v48  ;;  %v720_v54 = vmul.f32 0.00390625, %v706_v3 }
 0x1b3   : > { %v725_v28 = vadd.f32 %v724_v51, %v718_v50  ;;  %v781_v51 = vld [vmem:[%s1570_s4 + $0x10] sm:$0xff] }
 0x1b4   : > { %v712_v55 = vpop.xlane.xlu1 %711 }
 0x1b5   : > { %v722_v59 = vmul.f32 0.00390625, %v712_v55 }
 0x1c0   : > { %v703_v52 = vpop.xlane.xlu0 %702 }
 0x1c1   : > { %v719_v53 = vmul.f32 0.00390625, %v703_v52 }
 0x1c3   : > { %v726_v33 = vadd.f32 %v725_v28, %v719_v53 }
 0x1c4   : > { %v709_v38 = vpop.xlane.xlu0 %708 }
 0x1c5   : > { %v727_v56 = vadd.f32 %v726_v33, %v720_v54  ;;  %v721_v57 = vmul.f32 0.00390625, %v709_v38 }
 0x1c7   : > { %v728_v60 = vadd.f32 %v727_v56, %v721_v57 }
 0x1c8   : > { %v715_v0 = vpop.xlane.xlu0 %714 }
 0x1c9   : > { %v729_v1 = vadd.f32 %v728_v60, %v722_v59  ;;  %v723_v2 = vmul.f32 0.00390625, %v715_v0  ;;  %v797_v60 = vld [vmem:[%s1571_s5 + $0x10] sm:$0xff]  ;;  %v782_v0 = vld [vmem:[%s1570_s4 + $0x18] sm:$0xff] }
 0x1cb   : > { %v730_v4 = vadd.f32 %v729_v1, %v723_v2 }
 0x1cd   : > { %v731_v5 = vrot.slane %v730_v4, 4 }
 0x1cf   : > { %v732_v6 = vadd.f32 %v731_v5, %v730_v4 }
 0x1d1   : > { %v733_v7 = vrot.slane %v732_v6, 2 }
 0x1d3   : > { %v734_v8 = vadd.f32 %v733_v7, %v732_v6  ;;  %v801_v7 = vld [vmem:[%s1571_s5 + $0x30] sm:$0xff] }
 0x1d5   : > { %v735_v9 = vrot.slane %v734_v8, 1 }
 0x1d7   : > { %v736_v10 = vadd.f32 %v735_v9, %v734_v8  ;;  %v798_v8 = vld [vmem:[%s1571_s5 + $0x18] sm:$0xff]  ;;  %v784_v9 = vld [vmem:[%s1570_s4 + $0x28] sm:$0xff] }
 0x1d9   : > { %v738_v11 = vmul.f32 0.015625, %v736_v10 }
 0x1db   : > { %v739_v25 = vsub.f32 %v716_v49, %v738_v11  ;;  %v740_v12 = vsub.f32 %v717_v20, %v738_v11  ;;  %v741_v13 = vsub.f32 %v718_v50, %v738_v11  ;;  %v742_v26 = vsub.f32 %v719_v53, %v738_v11  ;;  %v795_v49 = vld [vmem:[%s1571_s5] sm:$0xff] }
 0x1dc   : > { %v743_v15 = vsub.f32 %v720_v54, %v738_v11  ;;  %v744_v17 = vsub.f32 %v721_v57, %v738_v11  ;;  %v745_v19 = vsub.f32 %v722_v59, %v738_v11  ;;  %v746_v22 = vsub.f32 %v723_v2, %v738_v11  ;;  %v783_v50 = vld [vmem:[%s1570_s4 + $0x20] sm:$0xff]  ;;  %v785_v57 = vld [vmem:[%s1570_s4 + $0x30] sm:$0xff] }
 0x1dd   : > { %v747_v14 = vmul.f32 %v739_v25, %v739_v25  ;;  %v748_v29 = vmul.f32 %v740_v12, %v740_v12  ;;  %v749_v30 = vmul.f32 %v741_v13, %v741_v13  ;;  %v750_v18 = vmul.f32 %v742_v26, %v742_v26  ;;  %v799_v59 = vld [vmem:[%s1571_s5 + $0x20] sm:$0xff] }
 0x1de   : > { %v751_v21 = vmul.f32 %v743_v15, %v743_v15  ;;  %v752_v41 = vmul.f32 %v744_v17, %v744_v17  ;;  %v753_v24 = vmul.f32 %v745_v19, %v745_v19  ;;  %v754_v27 = vmul.f32 %v746_v22, %v746_v22 }
 0x1df   : > { %v755_v16 = vadd.f32 %v748_v29, %v747_v14 }
 0x1e1   : > { %v756_v35 = vadd.f32 %v755_v16, %v749_v30  ;;  %v812_v16 = vld [vmem:[%s1572_s6 + $0x8] sm:$0xff] }
 0x1e3   : > { %v757_v36 = vadd.f32 %v756_v35, %v750_v18 }
 0x1e5   : > { %v758_v23 = vadd.f32 %v757_v36, %v751_v21  ;;  %v813_v36 = vld [vmem:[%s1572_s6 + $0x10] sm:$0xff] }
 0x1e7   : > { %v759_v42 = vadd.f32 %v758_v23, %v752_v41 }
 0x1e9   : > { %v760_v31 = vadd.f32 %v759_v42, %v753_v24 }
 0x1eb   : > { %v761_v58 = vadd.f32 %v760_v31, %v754_v27  ;;  %v815_v27 = vld [vmem:[%s1572_s6 + $0x20] sm:$0xff]  ;;  %v814_v31 = vld [vmem:[%s1572_s6 + $0x18] sm:$0xff] }
 0x1ed   : > { %v762_v32 = vrot.slane %v761_v58, 4 }
 0x1ef   : > { %v763_v61 = vadd.f32 %v762_v32, %v761_v58 }
 0x1f1   : > { %v764_v62 = vrot.slane %v763_v61, 2 }
 0x1f3   : > { %v765_v34 = vadd.f32 %v764_v62, %v763_v61 }
 0x1f5   : > { %v766_v63 = vrot.slane %v765_v34, 1 }
 0x1f7   : > { %v767_v37 = vadd.f32 %v766_v63, %v765_v34 }
 0x1f9   : > { %v768_v39 = vmul.f32 0.015625, %v767_v37  ;;  %v817_v37 = vld [vmem:[%s1572_s6 + $0x30] sm:$0xff] }
 0x1fb   : > { %v769_v40 = vadd.f32 1e-05, %v768_v39 }
 0x1fd   : > { %1134 = vrsqrt.f32 %v769_v40  ;;  %v816_v40 = vld [vmem:[%s1572_s6 + $0x28] sm:$0xff] }
 0x207   : > { %v1135_v43 = vpop.eup %1134 }
 0x208   : > { %v772_v46 = vmul.f32 %v1135_v43, %v740_v12  ;;  %v771_v48 = vmul.f32 %v1135_v43, %v739_v25  ;;  %v775_v20 = vmul.f32 %v1135_v43, %v743_v15  ;;  %v773_v3 = vmul.f32 %v1135_v43, %v741_v13  ;;  %v800_v13 = vld [vmem:[%s1571_s5 + $0x28] sm:$0xff]  ;;  %v802_v15 = vld [vmem:[%s1571_s5 + $0x38] sm:$0xff] }
 0x209   : > { %v777_v53 = vmul.f32 %v1135_v43, %v745_v19  ;;  %v774_v54 = vmul.f32 %v1135_v43, %v742_v26  ;;  %v776_v1 = vmul.f32 %v1135_v43, %v744_v17  ;;  %v778_v10 = vmul.f32 %v1135_v43, %v746_v22  ;;  %v786_v26 = vld [vmem:[%s1570_s4 + $0x38] sm:$0xff]  ;;  %v811_v17 = vld [vmem:[%s1572_s6] sm:$0xff] }
 0x20a   : > { %v788_v52 = vmul.f32 %v780_v44, %v772_v46  ;;  %v787_v28 = vmul.f32 %v779_v45, %v771_v48  ;;  %v791_v38 = vmul.f32 %v783_v50, %v775_v20  ;;  %v789_v56 = vmul.f32 %v781_v51, %v773_v3 }
 0x20b   : > { %v793_v5 = vmul.f32 %v785_v57, %v777_v53  ;;  %v790_v6 = vmul.f32 %v782_v0, %v774_v54  ;;  %v792_v12 = vmul.f32 %v784_v9, %v776_v1  ;;  %v794_v29 = vmul.f32 %v786_v26, %v778_v10 }
 0x20c   : > { %v804_v33 = vadd.f32 %v796_v47, %v788_v52  ;;  %v803_v55 = vadd.f32 %v795_v49, %v787_v28  ;;  %v807_v2 = vadd.f32 %v799_v59, %v791_v38  ;;  %v805_v4 = vadd.f32 %v797_v60, %v789_v56  ;;  %v818_v49 = vld [vmem:[%s1572_s6 + $0x38] sm:$0xff]  ;;  %v888_v60 = vld [vmem:[%s1573_s7] sm:$0x1] }
 0x20d   : > { %v809_v11 = vadd.f32 %v801_v7, %v793_v5  ;;  %v806_v25 = vadd.f32 %v798_v8, %v790_v6  ;;  %v808_v14 = vadd.f32 %v800_v13, %v792_v12  ;;  %v810_v30 = vadd.f32 %v802_v15, %v794_v29 }
 0x20e   : > { %826 = vperm.xlu0 %1058, %v804_v33   ;;  %821 = vperm.xlu1 %1059, %v803_v55  }
 0x212   : > { %841 = vperm.xlu0 %1058, %v807_v2   ;;  %831 = vperm.xlu1 %1059, %v805_v4  }
 0x216   : > { %851 = vperm.xlu0 %1058, %v809_v11   ;;  %836 = vperm.xlu1 %1059, %v806_v25  }
 0x21a   : > { %846 = vperm.xlu1 %1059, %v808_v14  }
 0x21e   : > { %856 = vperm.xlu1 %1059, %v810_v30  }
 0x28d   : > { %v827_v18 = vpop.permute.xlu0 %826  ;;  %v822_v35 = vpop.permute.xlu1 %821 }
 0x28e   : > { %v860_v19 = vmul.f32 %v827_v18, %v812_v16  ;;  %v859_v21 = vmul.f32 %v822_v35, %v811_v17 }
 0x290   : > { %v868_v23 = vsel %vm427_vm0, %v860_v19, 0.0  ;;  %v867_v24 = vsel %vm427_vm0, %v859_v21, 0.0 }
 0x291   : > { %v842_v22 = vpop.permute.xlu0 %841  ;;  %v832_v41 = vpop.permute.xlu1 %831  ;;  %v869_v32 = vadd.f32 %v868_v23, %v867_v24 }
 0x292   : > { %v861_v42 = vmul.f32 %v832_v41, %v813_v36  ;;  %v863_v62 = vmul.f32 %v842_v22, %v815_v27 }
 0x294   : > { %v870_v58 = vsel %vm427_vm0, %v861_v42, 0.0  ;;  %v874_v46 = vsel %vm427_vm0, %v863_v62, 0.0 }
 0x295   : > { %v837_v61 = vpop.permute.xlu1 %836  ;;  %v871_v63 = vadd.f32 %v870_v58, %v869_v32  ;;  %v852_v39 = vpop.permute.xlu0 %851 }
 0x296   : > { %v862_v34 = vmul.f32 %v837_v61, %v814_v31  ;;  %v865_v47 = vmul.f32 %v852_v39, %v817_v37 }
 0x298   : > { %v872_v43 = vsel %vm427_vm0, %v862_v34, 0.0  ;;  %v878_v52 = vsel %vm427_vm0, %v865_v47, 0.0 }
 0x299   : > { %v873_v44 = vadd.f32 %v872_v43, %v871_v63  ;;  %v847_v45 = vpop.permute.xlu1 %846 }
 0x29a   : > { %v864_v48 = vmul.f32 %v847_v45, %v816_v40 }
 0x29b   : > { %v875_v20 = vadd.f32 %v874_v46, %v873_v44 }
 0x29c   : > { %v876_v50 = vsel %vm427_vm0, %v864_v48, 0.0 }
 0x29d   : > { %v877_v3 = vadd.f32 %v876_v50, %v875_v20  ;;  %v857_v51 = vpop.permute.xlu1 %856 }
 0x29e   : > { %v866_v28 = vmul.f32 %v857_v51, %v818_v49 }
 0x29f   : > { %v879_v53 = vadd.f32 %v878_v52, %v877_v3 }
 0x2a0   : > { %v880_v54 = vsel %vm427_vm0, %v866_v28, 0.0 }
 0x2a1   : > { %v881_v33 = vadd.f32 %v880_v54, %v879_v53 }
 0x2a3   : > { %v882_v55 = vrot.slane %v881_v33, 4 }
 0x2a5   : > { %v883_v38 = vadd.f32 %v882_v55, %v881_v33 }
 0x2a7   : > { %v884_v56 = vrot.slane %v883_v38, 2 }
 0x2a9   : > { %v885_v57 = vadd.f32 %v884_v56, %v883_v38 }
 0x2ab   : > { %v886_v59 = vrot.slane %v885_v57, 1 }
 0x2ad   : > { %v887_v0 = vadd.f32 %v886_v59, %v885_v57 }
 0x2af   : > { %v889_v1 = vadd.f32 %v888_v60, %v887_v0 }
 0x2b1   : > { %v890_v2 = vmax.f32 %v889_v1, 0.0 }
 0x2b3   : > { %892 = vst.msk [vmem:[%s295_s21] sm:$0x1] %vm891_vm1, %v890_v2 }
 0x2b4   : > { %1149 = shalt.err (!%p1146_p5)
}
 0x2b5   : > { %s1150_s15 = scalar_lea.hbm %s1519_s24, 16  ;;  %s1154_s20 = scalar_lea.hbm %s1574_s8, 32 }
 0x2b6   : > { %p1151_p6 = scmp.ne.s32.totalorder %s1519_s24, %s1150_s15  ;;  %p1155_p10 = scmp.lt.u32.totalorder %s1519_s24, %s1574_s8 }
 0x2b7   : > { %p1156_p11 = scmp.lt.u32.totalorder %s1154_s20, %s1150_s15  ;;  %p1158_p13 = scmp.lt.u32.totalorder %s1150_s15, %s1519_s24 }
 0x2b8   : > { %p1152_p7 = pnand %p1151_p6, %p1303_p4 }
 0x2b9   : > { %p1157_p12 = por %p1156_p11, %p1155_p10 }
 0x2ba   : > { %p1153_p9 = pneg %p1152_p7 }
 0x2bb   : > { %p1159_p0 = por %p1158_p13, %p1157_p12 }
 0x2bd   : > { %p1160_p1 = pnand %p1159_p0, %p1153_p9 }
 0x2bf   : > { %1163 = shalt.err (!%p1160_p1)
}
 0x2c0   : > { %1002 = dma.vmem_to_hbm [thread:$0]  (%p1303_p4), %s1521_s22, 16, %s1519_s24, %s894_s25  }
 0x2c1 PF: > { %p1008_p2 = scmp.ge.s32.totalorder %s1214_s9, 2  ;;  %s918_s0 = sand.u32 1, %s1194_s26  }
 0x2c2   : > { %s919_s10 = scalar_lea.sflag [#allocation6], %s918_s0 }
 0x2c3   : > { %p1005_p3 = pnand %p1008_p2, %p1310_p8 }
 0x2c5   : > { %1189 = dma.done.wait (!%p1005_p3), %s919_s10, 16  }
 0x2c6   : > { %1191 = vsyncadd (!%p1005_p3), %s919_s10, 4294967280  ;;  %s22_s9 = sadd.s32 1, %s1214_s9   ;;  %s1577_s26 = smov %s1198_s27 }
 0x2c7   : > { %p19_p5 = scmp.ge.s32.totalorder %s22_s9, 4   ;;  %s1578_s27 = smov %s1202_s28 }
 0x2c8   : > { %s1579_s28 = smov %s1316_s17  ;;  %s1580_s29 = smov %s1210_s30 }
 0x2c9   : > { %s1581_s30 = smov %s1583_s12  ;;  %21 = sbr.rel (!%p19_p5) target bundleno = 4 (0x4), region = 91 }
 0x2d0   :  { %923 = vsyncpa [#allocation6], 1 }
 0x2d1   :  { %925 = vsyncpa [#allocation6 + $0x1], 1 }

</bundles_post_ra>
